<compile_context>
chip_gen: v7x
topology: tpu7x:2x2x1
jax: 0.10.0
libtpu: 0.0.40
codegen_flags: <defaults>
</compile_context>

<pallas_src>
import functools

import jax
import jax.numpy as jnp
import numpy as np
from jax.experimental import pallas as pl
from jax.experimental.pallas import tpu as pltpu

# --- board / module constants ------------------------------------------------
BOARD_WIDTH = 10
BOARD_HEIGHT = 20
N_QUEUE = 4
N_ACTIONS = 4            # len(ACTIONS)

ROI_HEIGHT = 4
CONV_CH = 64
QUEUE_CH = 32
INTERMED_CH = 32

D_BOARD = (BOARD_HEIGHT + 3) * BOARD_WIDTH          # 230
D_QUEUE = N_QUEUE * 7 + N_ACTIONS                   # 32
D_IN = D_BOARD + D_QUEUE                            # 262
D_CONV = CONV_CH * BOARD_HEIGHT                     # 1280
D_HEAD_IN = QUEUE_CH + D_CONV                       # 1312
PATCH = ROI_HEIGHT * BOARD_WIDTH                    # 40


def _round_up(a, b):
    return ((a + b - 1) // b) * b


# --- Pallas kernel ------------------------------------------------------------
def tetris_kernel(xb_ref, xq_ref,
                  wband_ref, bc_ref,
                  w1c_ref, wq_ref, b1_ref,
                  w2_ref, b2_ref,
                  w3_ref, b3_ref,
                  out_ref):
    # Conv(4x10) + ReLU as a single banded matmul: (TB,230)@(230,1280) on the MXU.
    conv = jnp.maximum(
        jnp.dot(xb_ref[...], wband_ref[...], preferred_element_type=jnp.float32)
        + bc_ref[...],
        0.0)                                                           # (TB, 1280) f32

    # Head layer 1: conv contraction + folded (linear) queue path + bias, then ReLU.
    h1 = (jnp.dot(conv.astype(jnp.bfloat16), w1c_ref[...],
                  preferred_element_type=jnp.float32)
          + jnp.dot(xq_ref[...], wq_ref[...],
                    preferred_element_type=jnp.float32)
          + b1_ref[...])                                               # (TB, 32)
    h1 = jnp.maximum(h1, 0.0)

    # Tail layers are tiny; keep f32 for accuracy.
    h2 = jnp.maximum(
        jnp.dot(h1, w2_ref[...], preferred_element_type=jnp.float32) + b2_ref[...],
        0.0)
    out_ref[...] = (jnp.dot(h2, w3_ref[...], preferred_element_type=jnp.float32)
                    + b3_ref[...])                                     # (TB, 1)


def tetris_net_pallas(x, params, tb=1024):
    # Generation-specific batch-tile sizing (f32 1280-wide scratch + bf16 streams):
    #   v5e: tb<=1024, v7x: tb~1024-2048, v6e: tb up to ~4096.  Default 1024 is safe
    #   everywhere; the demo below uses a tiny tb just to exercise the grid.
    (wc_mat, bc, wq, bq, w1, b1, w2, b2, w3, b3) = params
    B = x.shape[0]

    # ---- glue (plain JAX, one-time per call): split input, build banded conv weight,
    #      permute head-1 conv rows, fold the activation-free queue MLP ---------------
    xb = x[:, :D_BOARD]                                    # flat board, (B, 230)
    xq = x[:, D_BOARD:]                                    # queue/one-hots, (B, 32)

    # Banded conv weight: column r*64+c holds the 40 taps of channel c at flat board
    # rows [r*10, r*10+40) (the (4,10) window for output row r is contiguous when the
    # board is flattened row-major).
    wband = jnp.zeros((D_BOARD, D_CONV), jnp.float32)
    for r in range(BOARD_HEIGHT):
        wband = wband.at[r * BOARD_WIDTH: r * BOARD_WIDTH + PATCH,
                         r * CONV_CH:(r + 1) * CONV_CH].set(wc_mat)
    bc1280 = jnp.tile(bc, (1, BOARD_HEIGHT))               # [0, r*64+c] == bc[0, c]

    # PyTorch flattens conv output channel-major (index c*20+r); our conv columns are
    # r*64+c, so permute w1's conv rows accordingly and flatten to (1280, 32).
    w1c = w1[:D_CONV].reshape(CONV_CH, BOARD_HEIGHT, INTERMED_CH)
    w1c_flat = jnp.transpose(w1c, (1, 0, 2)).reshape(D_CONV, INTERMED_CH)
    w1q = w1[D_CONV:]                                      # (32, 32)

    # Queue MLP has no final activation -> fold exactly into head layer 1.
    wq_fold = wq @ w1q                                     # (32, 32)
    b1_fold = b1 + bq @ w1q                                # (1, 32)

    # ---- batch tiling / padding ----------------------------------------------------
    tb = _round_up(max(int(tb), 8), 8)
    TB = min(tb, _round_up(B, 8))
    B_pad = _round_up(B, TB)
    if B_pad != B:
        xb = jnp.pad(xb, ((0, B_pad - B), (0, 0)))
        xq = jnp.pad(xq, ((0, B_pad - B), (0, 0)))

    # bf16 operands for the two big matmuls (f32 accumulation in-kernel).
    xb_bf = xb.astype(jnp.bfloat16)
    xq_bf = xq.astype(jnp.bfloat16)
    wband_bf = wband.astype(jnp.bfloat16)
    w1c_bf = w1c_flat.astype(jnp.bfloat16)
    wq_bf = wq_fold.astype(jnp.bfloat16)

    resident = lambda shape: pl.BlockSpec(shape, lambda i: (0,) * len(shape))

    out = pl.pallas_call(
        tetris_kernel,
        out_shape=jax.ShapeDtypeStruct((B_pad, 1), jnp.float32),
        grid_spec=pltpu.PrefetchScalarGridSpec(
            num_scalar_prefetch=0,
            grid=(B_pad // TB,),
            in_specs=[
                pl.BlockSpec((TB, D_BOARD), lambda i: (i, 0)),      # board tile
                pl.BlockSpec((TB, D_QUEUE), lambda i: (i, 0)),      # queue tile
                resident((D_BOARD, D_CONV)),                        # banded conv weight
                resident((1, D_CONV)),                              # conv bias (tiled)
                resident((D_CONV, INTERMED_CH)),                    # head-1 conv weight
                resident((D_QUEUE, INTERMED_CH)),                   # folded queue weight
                resident((1, INTERMED_CH)),                         # folded head-1 bias
                resident((INTERMED_CH, INTERMED_CH)),               # head-2 weight
                resident((1, INTERMED_CH)),                         # head-2 bias
                resident((INTERMED_CH, 1)),                         # head-3 weight
                resident((1, 1)),                                   # head-3 bias
            ],
            out_specs=pl.BlockSpec((TB, 1), lambda i: (i, 0)),
        ),
        compiler_params=pltpu.CompilerParams(
            dimension_semantics=("parallel",),        # shard batch grid across TCs (v7x)
            vmem_limit_bytes=48 * 1024 * 1024,        # headroom, < 64 MiB v7x physical
        ),
    )(xb_bf, xq_bf, wband_bf, bc1280, w1c_bf, wq_bf, b1_fold, w2, b2, w3, b3)

    return out[:B]


# --- pure-JAX reference replicating the PyTorch forward exactly (f32) -----------
def tetris_net_reference(x, params):
    (wc_mat, bc, wq, bq, w1, b1, w2, b2, w3, b3) = params
    B = x.shape[0]
    xb = x[:, :D_BOARD].reshape(B, BOARD_HEIGHT + 3, BOARD_WIDTH)
    xq = x[:, D_BOARD:]

    rows = []
    for r in range(BOARD_HEIGHT):
        patch = xb[:, r:r + ROI_HEIGHT, :].reshape(B, PATCH)
        rows.append(jnp.maximum(patch @ wc_mat + bc, 0.0))              # (B, 64)
    conv = jnp.stack(rows, axis=2)                                      # (B, 64, 20)
    conv_flat = conv.reshape(B, D_CONV)                                 # c*20 + r order

    q = xq @ wq + bq                                                    # no activation
    feat = jnp.concatenate([conv_flat, q], axis=1)                      # (B, 1312)
    h1 = jnp.maximum(feat @ w1 + b1, 0.0)
    h2 = jnp.maximum(h1 @ w2 + b2, 0.0)
    return h2 @ w3 + b3


def init_params(key):
    ks = jax.random.split(key, 10)
    s = 0.05
    # conv weight generated in PyTorch layout (out, in=1, kh, kw) then flattened to (40, 64)
    wconv = jax.random.normal(ks[0], (CONV_CH, 1, ROI_HEIGHT, BOARD_WIDTH), jnp.float32) * s
    wc_mat = wconv.reshape(CONV_CH, PATCH).T                            # (40, 64)
    bc = jax.random.normal(ks[1], (1, CONV_CH), jnp.float32) * s
    wq = jax.random.normal(ks[2], (D_QUEUE, QUEUE_CH), jnp.float32) * s
    bq = jax.random.normal(ks[3], (1, QUEUE_CH), jnp.float32) * s
    w1 = jax.random.normal(ks[4], (D_HEAD_IN, INTERMED_CH), jnp.float32) * s
    b1 = jax.random.normal(ks[5], (1, INTERMED_CH), jnp.float32) * s
    w2 = jax.random.normal(ks[6], (INTERMED_CH, INTERMED_CH), jnp.float32) * s
    b2 = jax.random.normal(ks[7], (1, INTERMED_CH), jnp.float32) * s
    w3 = jax.random.normal(ks[8], (INTERMED_CH, 1), jnp.float32) * s
    b3 = jax.random.normal(ks[9], (1, 1), jnp.float32) * s
    return (wc_mat, bc, wq, bq, w1, b1, w2, b2, w3, b3)


if __name__ == "__main__":
    key = jax.random.PRNGKey(0)
    kx, kp = jax.random.split(key)

    # Small demo shapes: B=56 with a tiny batch tile (tb=16) exercises the batch grid
    # (4 steps), batch padding (56 -> 64) and weight residency across grid steps.
    B = 56
    x = jax.random.uniform(kx, (B, D_IN), jnp.float32)
    params = init_params(kp)

    fwd = jax.jit(functools.partial(tetris_net_pallas, tb=16))
    out = jax.block_until_ready(fwd(x, params))
    ref = jax.block_until_ready(tetris_net_reference(x, params))

    assert out.shape == (B, 1), out.shape
    # bf16 MXU operands -> compare against the f32 reference with a looser tolerance.
    np.testing.assert_allclose(np.asarray(out), np.asarray(ref), rtol=2e-2, atol=2e-2)
    print("KERNEL_OK")
</pallas_src>

<mosaic_0001>
module attributes {stable_mosaic.version = 11 : i64} {
  func.func @tetris_kernel(%arg0: i32, %arg1: memref<16x230xbf16, #tpu.memory_space<vmem>>, %arg2: memref<16x32xbf16, #tpu.memory_space<vmem>>, %arg3: memref<230x1280xbf16, #tpu.memory_space<vmem>>, %arg4: memref<1x1280xf32, #tpu.memory_space<vmem>>, %arg5: memref<1280x32xbf16, #tpu.memory_space<vmem>>, %arg6: memref<32x32xbf16, #tpu.memory_space<vmem>>, %arg7: memref<1x32xf32, #tpu.memory_space<vmem>>, %arg8: memref<32x32xf32, #tpu.memory_space<vmem>>, %arg9: memref<1x32xf32, #tpu.memory_space<vmem>>, %arg10: memref<32x1xf32, #tpu.memory_space<vmem>>, %arg11: memref<1x1xf32, #tpu.memory_space<vmem>>, %arg12: memref<16x1xf32, #tpu.memory_space<vmem>>) attributes {dimension_semantics = [#tpu.dimension_semantics<parallel>], iteration_bounds = array<i64: 4>, scalar_prefetch = 0 : i64, scratch_operands = 0 : i64, tpu.core_type = #tpu.core_type<tc>, window_params = [{transform_indices = @transform_0, window_bounds = array<i64: 16, 230>}, {transform_indices = @transform_1, window_bounds = array<i64: 16, 32>}, {pipeline_mode = #tpu.pipeline_mode<synchronous>, transform_indices = @transform_2, window_bounds = array<i64: 230, 1280>}, {pipeline_mode = #tpu.pipeline_mode<synchronous>, transform_indices = @transform_3, window_bounds = array<i64: 1, 1280>}, {pipeline_mode = #tpu.pipeline_mode<synchronous>, transform_indices = @transform_4, window_bounds = array<i64: 1280, 32>}, {pipeline_mode = #tpu.pipeline_mode<synchronous>, transform_indices = @transform_5, window_bounds = array<i64: 32, 32>}, {pipeline_mode = #tpu.pipeline_mode<synchronous>, transform_indices = @transform_6, window_bounds = array<i64: 1, 32>}, {pipeline_mode = #tpu.pipeline_mode<synchronous>, transform_indices = @transform_7, window_bounds = array<i64: 32, 32>}, {pipeline_mode = #tpu.pipeline_mode<synchronous>, transform_indices = @transform_8, window_bounds = array<i64: 1, 32>}, {pipeline_mode = #tpu.pipeline_mode<synchronous>, transform_indices = @transform_9, window_bounds = array<i64: 32, 1>}, {pipeline_mode = #tpu.pipeline_mode<synchronous>, transform_indices = @transform_10, window_bounds = array<i64: 1, 1>}, {transform_indices = @transform_11, window_bounds = array<i64: 16, 1>}]} {
    %c0 = arith.constant 0 : index
    %c0_0 = arith.constant 0 : index
    %0 = vector.load %arg1[%c0, %c0_0] : memref<16x230xbf16, #tpu.memory_space<vmem>>, vector<16x230xbf16>
    %c0_1 = arith.constant 0 : index
    %c0_2 = arith.constant 0 : index
    %1 = vector.load %arg3[%c0_1, %c0_2] : memref<230x1280xbf16, #tpu.memory_space<vmem>>, vector<230x1280xbf16>
    %cst = arith.constant dense<0.000000e+00> : vector<16x1280xf32>
    %2 = tpu.matmul %0, %1, %cst {dimension_numbers = #tpu.dot_dimension_numbers<[1], [0], [0], [1], [0, 0, 1, 1], [], []>} : vector<16x230xbf16>, vector<230x1280xbf16>, vector<16x1280xf32> -> vector<16x1280xf32>
    %c0_3 = arith.constant 0 : index
    %c0_4 = arith.constant 0 : index
    %3 = vector.load %arg4[%c0_3, %c0_4] : memref<1x1280xf32, #tpu.memory_space<vmem>>, vector<1x1280xf32>
    %4 = vector.broadcast %3 : vector<1x1280xf32> to vector<16x1280xf32>
    %5 = arith.addf %2, %4 : vector<16x1280xf32>
    %cst_5 = arith.constant 0.000000e+00 : f32
    %6 = vector.broadcast %cst_5 : f32 to vector<16x1280xf32>
    %7 = arith.maximumf %5, %6 : vector<16x1280xf32>
    %8 = arith.truncf %7 : vector<16x1280xf32> to vector<16x1280xbf16>
    %c0_6 = arith.constant 0 : index
    %c0_7 = arith.constant 0 : index
    %9 = vector.load %arg5[%c0_6, %c0_7] : memref<1280x32xbf16, #tpu.memory_space<vmem>>, vector<1280x32xbf16>
    %cst_8 = arith.constant dense<0.000000e+00> : vector<16x32xf32>
    %10 = tpu.matmul %8, %9, %cst_8 {dimension_numbers = #tpu.dot_dimension_numbers<[1], [0], [0], [1], [0, 0, 1, 1], [], []>} : vector<16x1280xbf16>, vector<1280x32xbf16>, vector<16x32xf32> -> vector<16x32xf32>
    %c0_9 = arith.constant 0 : index
    %c0_10 = arith.constant 0 : index
    %11 = vector.load %arg2[%c0_9, %c0_10] : memref<16x32xbf16, #tpu.memory_space<vmem>>, vector<16x32xbf16>
    %c0_11 = arith.constant 0 : index
    %c0_12 = arith.constant 0 : index
    %12 = vector.load %arg6[%c0_11, %c0_12] : memref<32x32xbf16, #tpu.memory_space<vmem>>, vector<32x32xbf16>
    %cst_13 = arith.constant dense<0.000000e+00> : vector<16x32xf32>
    %13 = tpu.matmul %11, %12, %cst_13 {dimension_numbers = #tpu.dot_dimension_numbers<[1], [0], [0], [1], [0, 0, 1, 1], [], []>} : vector<16x32xbf16>, vector<32x32xbf16>, vector<16x32xf32> -> vector<16x32xf32>
    %14 = arith.addf %10, %13 : vector<16x32xf32>
    %c0_14 = arith.constant 0 : index
    %c0_15 = arith.constant 0 : index
    %15 = vector.load %arg7[%c0_14, %c0_15] : memref<1x32xf32, #tpu.memory_space<vmem>>, vector<1x32xf32>
    %16 = vector.broadcast %15 : vector<1x32xf32> to vector<16x32xf32>
    %17 = arith.addf %14, %16 : vector<16x32xf32>
    %cst_16 = arith.constant 0.000000e+00 : f32
    %18 = vector.broadcast %cst_16 : f32 to vector<16x32xf32>
    %19 = arith.maximumf %17, %18 : vector<16x32xf32>
    %c0_17 = arith.constant 0 : index
    %c0_18 = arith.constant 0 : index
    %20 = vector.load %arg8[%c0_17, %c0_18] : memref<32x32xf32, #tpu.memory_space<vmem>>, vector<32x32xf32>
    %cst_19 = arith.constant dense<0.000000e+00> : vector<16x32xf32>
    %21 = tpu.matmul %19, %20, %cst_19 {dimension_numbers = #tpu.dot_dimension_numbers<[1], [0], [0], [1], [0, 0, 1, 1], [], []>} : vector<16x32xf32>, vector<32x32xf32>, vector<16x32xf32> -> vector<16x32xf32>
    %c0_20 = arith.constant 0 : index
    %c0_21 = arith.constant 0 : index
    %22 = vector.load %arg9[%c0_20, %c0_21] : memref<1x32xf32, #tpu.memory_space<vmem>>, vector<1x32xf32>
    %23 = vector.broadcast %22 : vector<1x32xf32> to vector<16x32xf32>
    %24 = arith.addf %21, %23 : vector<16x32xf32>
    %cst_22 = arith.constant 0.000000e+00 : f32
    %25 = vector.broadcast %cst_22 : f32 to vector<16x32xf32>
    %26 = arith.maximumf %24, %25 : vector<16x32xf32>
    %c0_23 = arith.constant 0 : index
    %c0_24 = arith.constant 0 : index
    %27 = vector.load %arg10[%c0_23, %c0_24] : memref<32x1xf32, #tpu.memory_space<vmem>>, vector<32x1xf32>
    %cst_25 = arith.constant dense<0.000000e+00> : vector<16x1xf32>
    %28 = tpu.matmul %26, %27, %cst_25 {dimension_numbers = #tpu.dot_dimension_numbers<[1], [0], [0], [1], [0, 0, 1, 1], [], []>} : vector<16x32xf32>, vector<32x1xf32>, vector<16x1xf32> -> vector<16x1xf32>
    %c0_26 = arith.constant 0 : index
    %c0_27 = arith.constant 0 : index
    %29 = vector.load %arg11[%c0_26, %c0_27] : memref<1x1xf32, #tpu.memory_space<vmem>>, vector<1x1xf32>
    %30 = vector.broadcast %29 : vector<1x1xf32> to vector<16x1xf32>
    %31 = arith.addf %28, %30 : vector<16x1xf32>
    %c0_28 = arith.constant 0 : index
    %c0_29 = arith.constant 0 : index
    %32 = vector.load %arg12[%c0_28, %c0_29] : memref<16x1xf32, #tpu.memory_space<vmem>>, vector<16x1xf32>
    tpu.vector_store %arg12[%c0_28, %c0_29], %31 {strides = array<i32>} : memref<16x1xf32, #tpu.memory_space<vmem>>, vector<16x1xf32>,
    return
  }
  func.func @transform_0(%arg0: i32) -> (i32, i32) {
    %c0_i32 = arith.constant 0 : i32
    %c0_i32_0 = arith.constant 0 : i32
    return %arg0, %c0_i32 : i32, i32
  }
  func.func @transform_1(%arg0: i32) -> (i32, i32) {
    %c0_i32 = arith.constant 0 : i32
    %c0_i32_0 = arith.constant 0 : i32
    return %arg0, %c0_i32 : i32, i32
  }
  func.func @transform_2(%arg0: i32) -> (i32, i32) {
    %c0_i32 = arith.constant 0 : i32
    %c0_i32_0 = arith.constant 0 : i32
    %c0_i32_1 = arith.constant 0 : i32
    return %c0_i32, %c0_i32_0 : i32, i32
  }
  func.func @transform_3(%arg0: i32) -> (i32, i32) {
    %c0_i32 = arith.constant 0 : i32
    %c0_i32_0 = arith.constant 0 : i32
    %c0_i32_1 = arith.constant 0 : i32
    return %c0_i32, %c0_i32_0 : i32, i32
  }
  func.func @transform_4(%arg0: i32) -> (i32, i32) {
    %c0_i32 = arith.constant 0 : i32
    %c0_i32_0 = arith.constant 0 : i32
    %c0_i32_1 = arith.constant 0 : i32
    return %c0_i32, %c0_i32_0 : i32, i32
  }
  func.func @transform_5(%arg0: i32) -> (i32, i32) {
    %c0_i32 = arith.constant 0 : i32
    %c0_i32_0 = arith.constant 0 : i32
    %c0_i32_1 = arith.constant 0 : i32
    return %c0_i32, %c0_i32_0 : i32, i32
  }
  func.func @transform_6(%arg0: i32) -> (i32, i32) {
    %c0_i32 = arith.constant 0 : i32
    %c0_i32_0 = arith.constant 0 : i32
    %c0_i32_1 = arith.constant 0 : i32
    return %c0_i32, %c0_i32_0 : i32, i32
  }
  func.func @transform_7(%arg0: i32) -> (i32, i32) {
    %c0_i32 = arith.constant 0 : i32
    %c0_i32_0 = arith.constant 0 : i32
    %c0_i32_1 = arith.constant 0 : i32
    return %c0_i32, %c0_i32_0 : i32, i32
  }
  func.func @transform_8(%arg0: i32) -> (i32, i32) {
    %c0_i32 = arith.constant 0 : i32
    %c0_i32_0 = arith.constant 0 : i32
    %c0_i32_1 = arith.constant 0 : i32
    return %c0_i32, %c0_i32_0 : i32, i32
  }
  func.func @transform_9(%arg0: i32) -> (i32, i32) {
    %c0_i32 = arith.constant 0 : i32
    %c0_i32_0 = arith.constant 0 : i32
    %c0_i32_1 = arith.constant 0 : i32
    return %c0_i32, %c0_i32_0 : i32, i32
  }
  func.func @transform_10(%arg0: i32) -> (i32, i32) {
    %c0_i32 = arith.constant 0 : i32
    %c0_i32_0 = arith.constant 0 : i32
    %c0_i32_1 = arith.constant 0 : i32
    return %c0_i32, %c0_i32_0 : i32, i32
  }
  func.func @transform_11(%arg0: i32) -> (i32, i32) {
    %c0_i32 = arith.constant 0 : i32
    %c0_i32_0 = arith.constant 0 : i32
    return %arg0, %c0_i32 : i32, i32
  }
}

</mosaic_0001>

<bundles_post_ra>
// kernel: tetris_net_pallas.1
= control target key start
LH: loop header
LB: loop body
LE: loop exit
PB: predicated region body
PF: predicated region fallthrough
CT: control target
= control target key end

     0   :  { %s3642_s19 = smov 0   ;;  %s4464_s0 = inlined_call_operand.vmem [shape: bf16[64,230], index: 0, kind: input, shape index: {}]   ;;  %s4465_s1 = inlined_call_operand.vmem [shape: bf16[64,32], index: 1, kind: input, shape index: {}]   ;;  %s4466_s2 = inlined_call_operand.vmem [shape: bf16[230,1280], index: 2, kind: input, shape index: {}]   ;;  %s4467_s3 = inlined_call_operand.vmem [shape: f32[1,1280], index: 3, kind: input, shape index: {}]   ;;  %s4468_s4 = inlined_call_operand.vmem [shape: bf16[1280,32], index: 4, kind: input, shape index: {}]   ;;  %s4469_s5 = inlined_call_operand.vmem [shape: bf16[32,32], index: 5, kind: input, shape index: {}]   ;;  %s4470_s6 = inlined_call_operand.vmem [shape: f32[1,32], index: 6, kind: input, shape index: {}]   ;;  %s4471_s7 = inlined_call_operand.vmem [shape: f32[32,32], index: 7, kind: input, shape index: {}]   ;;  %s4472_s8 = inlined_call_operand.vmem [shape: f32[1,32], index: 8, kind: input, shape index: {}]   ;;  %s4473_s9 = inlined_call_operand.vmem [shape: f32[32,1], index: 9, kind: input, shape index: {}]   ;;  %s4474_s10 = inlined_call_operand.<no memory space> [shape: f32[1,1], index: 10, kind: input, shape index: {}]   ;;  %s4475_s11 = inlined_call_operand.vmem [shape: f32[64,1], index: 11, kind: output, shape index: {}]  }
   0x1   :  { %v16_v0 = vstv %s4474_s10 }
   0x2   :  { %17 = vst [vmem:[#allocation2] sm:$0x1] %v16_v0 }
   0x3 LB: > { %s2814_s20 = sadd.s32 4294967295, %s3575_s19   ;;  %p2818_p0 = scmp.ge.s32.totalorder %s3575_s19, 1  ;;  %s3575_s19 = sphi %s3642_s19, %s23_s19  }
   0x4   : > { %p352_p1 = scmp.lt.s32.totalorder %s3575_s19, 5 }
   0x6   : > { %p353_p2 = pnand %p2818_p0, %p352_p1 }
   0x7   : > { %v3263_v1 = vld [vmem:[%s4466_s2 + $0x4] ss:$40 sps:$4 sm:$0xff] (!%p353_p2)   ;;  %v3265_v2 = vld [vmem:[%s4466_s2] ss:$40 sps:$4 sm:$0xff] (!%p353_p2)   ;;  %v3268_v4 = vld [vmem:[%s4466_s2 + $0x54] ss:$40 sps:$4 sm:$0xff] (!%p353_p2)  }
   0x8   : > { %356 = sbr.rel (%p353_p2) target bundleno = 1067 (0x42b), region = 64  ;;  %1388 = vmatprep.subr.bf16.mxu0 (!%p353_p2), %v3263_v1  ;;  %v3266_v3 = vld [vmem:[%s4466_s2 + $0xc] ss:$40 sps:$4 sm:$0xff] (!%p353_p2)   ;;  %v3270_v5 = vld [vmem:[%s4466_s2 + $0x8] ss:$40 sps:$4 sm:$0xff] (!%p353_p2)   ;;  %s2819_s15 = sshll.u32 (!%p353_p2), %s2814_s20, 1 }
   0x9   : > { %1389 = vmatpush1.bf16.msra.mxu0 (!%p353_p2), %v3265_v2  ;;  %v3271_v6 = vld [vmem:[%s4466_s2 + $0x50] ss:$40 sps:$4 sm:$0xff] (!%p353_p2)   ;;  %1431 = vmatprep.subr.bf16.mxu1 (!%p353_p2), %v3266_v3  ;;  %v3272_v7 = vld [vmem:[%s4466_s2 + $0x5c] ss:$40 sps:$4 sm:$0xff] (!%p353_p2)   ;;  %v3277_v10 = vld [vmem:[%s4466_s2 + $0xa0] ss:$40 sps:$4 sm:$0xff] (!%p353_p2)  }
   0xa   : > { %1390 = vmatprep.subr.bf16.mxu0 (!%p353_p2), %v3268_v4  ;;  %1432 = vmatpush1.bf16.msra.mxu1 (!%p353_p2), %v3270_v5  ;;  %v3274_v8 = vld [vmem:[%s4466_s2 + $0xa4] ss:$40 sps:$4 sm:$0xff] (!%p353_p2)   ;;  %v3276_v9 = vld [vmem:[%s4466_s2 + $0x58] ss:$40 sps:$4 sm:$0xff] (!%p353_p2)   ;;  %v3280_v12 = vld [vmem:[%s4466_s2 + $0xf4] ss:$40 sps:$4 sm:$0xff] (!%p353_p2)  }
   0xb   : > { %1433 = vmatprep.subr.bf16.mxu1 (!%p353_p2), %v3272_v7  ;;  %v3278_v11 = vld [vmem:[%s4466_s2 + $0xac] ss:$40 sps:$4 sm:$0xff] (!%p353_p2)   ;;  %v3282_v13 = vld [vmem:[%s4466_s2 + $0xa8] ss:$40 sps:$4 sm:$0xff] (!%p353_p2)   ;;  %v3284_v14 = vld [vmem:[%s4466_s2 + $0xfc] ss:$40 sps:$4 sm:$0xff] (!%p353_p2)  }
   0xc   : > { %v3283_v15 = vld [vmem:[%s4466_s2 + $0xf0] ss:$40 sps:$4 sm:$0xff] (!%p353_p2)   ;;  %v3286_v16 = vld [vmem:[%s4466_s2 + $0x144] ss:$40 sps:$4 sm:$0xff] (!%p353_p2)   ;;  %v3289_v19 = vld [vmem:[%s4466_s2 + $0x140] ss:$40 sps:$4 sm:$0xff] (!%p353_p2)  }
   0xd   : > { %1391 = vmatpush1.bf16.msra.mxu0 (!%p353_p2), %v3271_v6  ;;  %v3288_v17 = vld [vmem:[%s4466_s2 + $0xf8] ss:$40 sps:$4 sm:$0xff] (!%p353_p2)   ;;  %v3290_v18 = vld [vmem:[%s4466_s2 + $0x14c] ss:$40 sps:$4 sm:$0xff] (!%p353_p2)   ;;  %v3294_v21 = vld [vmem:[%s4466_s2 + $0x148] ss:$40 sps:$4 sm:$0xff] (!%p353_p2)  }
   0xe   : > { %1392 = vmatprep.subr.bf16.mxu0 (!%p353_p2), %v3274_v8  ;;  %1434 = vmatpush1.bf16.msra.mxu1 (!%p353_p2), %v3276_v9  ;;  %v3292_v20 = vld [vmem:[%s4466_s2 + $0x194] ss:$40 sps:$4 sm:$0xff] (!%p353_p2)   ;;  %v3295_v23 = vld [vmem:[%s4466_s2 + $0x190] ss:$40 sps:$4 sm:$0xff] (!%p353_p2)   ;;  %v3298_v24 = vld [vmem:[%s4466_s2 + $0x1e4] ss:$40 sps:$4 sm:$0xff] (!%p353_p2)  }
   0xf   : > { %1435 = vmatprep.subr.bf16.mxu1 %v3278_v11  ;;  %v3296_v22 = vld [vmem:[%s4466_s2 + $0x19c] ss:$40 sps:$4 sm:$0xff]   ;;  %v3300_v25 = vld [vmem:[%s4466_s2 + $0x198] ss:$40 sps:$4 sm:$0xff]   ;;  %v3302_v26 = vld [vmem:[%s4466_s2 + $0x1ec] ss:$40 sps:$4 sm:$0xff]  }
  0x10   : > { %v3301_v27 = vld [vmem:[%s4466_s2 + $0x1e0] ss:$40 sps:$4 sm:$0xff]   ;;  %v3304_v28 = vld [vmem:[%s4466_s2 + $0x234] ss:$40 sps:$4 sm:$0xff]   ;;  %p399_p3 = scmp.lt.s32.totalorder %s2819_s15, 7  ;;  %vm1353_vm0 = vcmask 834560  }
  0x11   : > { %1393 = vmatpush1.bf16.msra.mxu0 %v3277_v10  ;;  %v3306_v29 = vld [vmem:[%s4466_s2 + $0x1e8] ss:$40 sps:$4 sm:$0xff]   ;;  %v3308_v30 = vld [vmem:[%s4466_s2 + $0x23c] ss:$40 sps:$4 sm:$0xff]   ;;  %v3312_v33 = vld [vmem:[%s4466_s2 + $0x238] ss:$40 sps:$4 sm:$0xff]  }
  0x12   : > { %1394 = vmatprep.subr.bf16.mxu0 %v3280_v12  ;;  %1436 = vmatpush1.bf16.msra.mxu1 %v3282_v13  ;;  %v3307_v31 = vld [vmem:[%s4466_s2 + $0x230] ss:$40 sps:$4 sm:$0xff]   ;;  %v3310_v32 = vld [vmem:[%s4466_s2 + $0x284] ss:$40 sps:$4 sm:$0xff]   ;;  %s4477_s15 = smov (!%p399_p3, %s2819_s15), 7  ;;  %vm1357_vm1 = vcmask 1042432  }
  0x13   : > { %1437 = vmatprep.subr.bf16.mxu1 %v3284_v14  ;;  %v3314_v34 = vld [vmem:[%s4466_s2 + $0x28c] ss:$40 sps:$4 sm:$0xff]   ;;  %v3313_v35 = vld [vmem:[%s4466_s2 + $0x280] ss:$40 sps:$4 sm:$0xff]   ;;  %s3081_s22 = sshll.u32 %s4477_s15, 3  ;;  %s2823_s12 = sshll.u32 %s4477_s15, 2 }
  0x14   : > { %v3316_v36 = vld [vmem:[%s4466_s2 + $0x2d4] ss:$40 sps:$4 sm:$0xff]   ;;  %v3318_v37 = vld [vmem:[%s4466_s2 + $0x288] ss:$40 sps:$4 sm:$0xff]   ;;  %s3777_s29 = scalar_lea.vmem %s4464_s0, %s3081_s22  ;;  %v3322_v40 = vld [vmem:[%s4466_s2 + $0x324] ss:$40 sps:$4 sm:$0xff]   ;;  %s3989_s24 = scalar_lea.vmem %s4465_s1, %s2823_s12 }
  0x15   : > { %1395 = vmatpush1.bf16.msra.mxu0 %v3283_v15  ;;  %v3320_v38 = vld [vmem:[%s4466_s2 + $0x2dc] ss:$40 sps:$4 sm:$0xff]   ;;  %v3319_v39 = vld [vmem:[%s4466_s2 + $0x2d0] ss:$40 sps:$4 sm:$0xff]   ;;  %v3326_v42 = vld [vmem:[%s4466_s2 + $0x32c] ss:$40 sps:$4 sm:$0xff]   ;;  %s415_s14 = scalar_lea.vmem %s4475_s11, %s3081_s22 }
  0x16   : > { %1396 = vmatprep.subr.bf16.mxu0 %v3286_v16  ;;  %1438 = vmatpush1.bf16.msra.mxu1 %v3288_v17  ;;  %v3324_v41 = vld [vmem:[%s4466_s2 + $0x2d8] ss:$40 sps:$4 sm:$0xff]   ;;  %v3789_v43 = vld [vmem:[%s3777_s29 + $0x4] ss:$8 sps:$4 sm:$0xff]   ;;  %v3328_v45 = vld [vmem:[%s4466_s2 + $0x374] ss:$40 sps:$4 sm:$0xff]  }
  0x17   : > { %1439 = vmatprep.subr.bf16.mxu1 %v3290_v18  ;;  %v3325_v44 = vld [vmem:[%s4466_s2 + $0x320] ss:$40 sps:$4 sm:$0xff]   ;;  %2979 = vmatprep.mubr.msk.bf16.mxu0 %vm1353_vm0, %v3789_v43  ;;  %v3332_v47 = vld [vmem:[%s4466_s2 + $0x37c] ss:$40 sps:$4 sm:$0xff]   ;;  %v3331_v48 = vld [vmem:[%s4466_s2 + $0x370] ss:$40 sps:$4 sm:$0xff]  }
  0x18   : > { %v3330_v46 = vld [vmem:[%s4466_s2 + $0x328] ss:$40 sps:$4 sm:$0xff]   ;;  %2981 = vmatprep.mubr.msk.bf16.mxu1 %vm1353_vm0, %v3789_v43  ;;  %v3334_v49 = vld [vmem:[%s4466_s2 + $0x3c4] ss:$40 sps:$4 sm:$0xff]   ;;  %v3336_v50 = vld [vmem:[%s4466_s2 + $0x378] ss:$40 sps:$4 sm:$0xff]  }
  0x19   : > { %1397 = vmatpush1.bf16.msra.mxu0 %v3289_v19  ;;  %v3338_v51 = vld [vmem:[%s4466_s2 + $0x3cc] ss:$40 sps:$4 sm:$0xff]   ;;  %v3337_v52 = vld [vmem:[%s4466_s2 + $0x3c0] ss:$40 sps:$4 sm:$0xff]   ;;  %v3343_v55 = vld [vmem:[%s4466_s2 + $0x410] ss:$40 sps:$4 sm:$0xff]  }
  0x1a   : > { %1398 = vmatprep.subr.bf16.mxu0 %v3292_v20  ;;  %1440 = vmatpush1.bf16.msra.mxu1 %v3294_v21  ;;  %v3340_v53 = vld [vmem:[%s4466_s2 + $0x414] ss:$40 sps:$4 sm:$0xff]   ;;  %v3342_v54 = vld [vmem:[%s4466_s2 + $0x3c8] ss:$40 sps:$4 sm:$0xff]   ;;  %v560_v56 = vld [vmem:[%s4466_s2 + $0x460] sm:$0x77] }
  0x1b   : > { %1441 = vmatprep.subr.bf16.mxu1 %v3296_v22  ;;  %v3344_v57 = vld [vmem:[%s4466_s2 + $0x41c] ss:$40 sps:$4 sm:$0xff]   ;;  %v561_v58 = vld [vmem:[%s4466_s2 + $0x468] sm:$0x77]  ;;  %v2969_v59 = vcombine.high %v560_v56, %v560_v56  ;;  %v2968_v60 = vcombine.low %v560_v56, %v560_v56  ;;  %v3347_v61 = vld [vmem:[%s4466_s2 + $0x418] ss:$40 sps:$4 sm:$0xff]  }
  0x1c   : > { %v2971_v62 = vcombine.high %v561_v58, %v561_v58  ;;  %v2970_v63 = vcombine.low %v561_v58, %v561_v58  ;;  %v3356_v1 = vld [vmem:[%s4466_s2 + $0x14] ss:$40 sps:$4 sm:$0xff]   ;;  %v3849_v2 = vld [vmem:[%s3777_s29] ss:$8 sps:$4 sm:$0xff]   ;;  %v3354_v5 = vld [vmem:[%s4466_s2 + $0x10] ss:$40 sps:$4 sm:$0xff]  }
  0x1d   : > { %1399 = vmatpush1.bf16.msra.mxu0 %v3295_v23  ;;  %v1359_v0 = vsel %vm1357_vm1, %v2968_v60, 0  ;;  %v3359_v4 = vld [vmem:[%s4466_s2 + $0x1c] ss:$40 sps:$4 sm:$0xff]   ;;  %v3357_v7 = vld [vmem:[%s4466_s2 + $0x18] ss:$40 sps:$4 sm:$0xff]   ;;  %vm1816_vm2 = vcmask 261120  }
  0x1e   : > { %1400 = vmatprep.subr.bf16.mxu0 %v3298_v24  ;;  %1442 = vmatpush1.bf16.msra.mxu1 %v3300_v25  ;;  %v1365_v3 = vsel %vm1357_vm1, %v2970_v63, 0  ;;  %v3362_v6 = vld [vmem:[%s4466_s2 + $0x64] ss:$40 sps:$4 sm:$0xff]   ;;  %v3360_v9 = vld [vmem:[%s4466_s2 + $0x60] ss:$40 sps:$4 sm:$0xff]   ;;  %vm3578_vm3 = vmmov 0  }
  0x1f   : > { %1443 = vmatprep.subr.bf16.mxu1 %v3302_v26  ;;  %v3365_v8 = vld [vmem:[%s4466_s2 + $0x6c] ss:$40 sps:$4 sm:$0xff]   ;;  %v3363_v11 = vld [vmem:[%s4466_s2 + $0x68] ss:$40 sps:$4 sm:$0xff]   ;;  %v3371_v12 = vld [vmem:[%s4466_s2 + $0xbc] ss:$40 sps:$4 sm:$0xff]  }
  0x20   : > { %v3368_v10 = vld [vmem:[%s4466_s2 + $0xb4] ss:$40 sps:$4 sm:$0xff]   ;;  %v3366_v13 = vld [vmem:[%s4466_s2 + $0xb0] ss:$40 sps:$4 sm:$0xff]   ;;  %v3374_v14 = vld [vmem:[%s4466_s2 + $0x104] ss:$40 sps:$4 sm:$0xff]  }
  0x21   : > { %1401 = vmatpush1.bf16.msra.mxu0 %v3301_v27  ;;  %v3369_v15 = vld [vmem:[%s4466_s2 + $0xb8] ss:$40 sps:$4 sm:$0xff]   ;;  %v3377_v16 = vld [vmem:[%s4466_s2 + $0x10c] ss:$40 sps:$4 sm:$0xff]   ;;  %v3375_v19 = vld [vmem:[%s4466_s2 + $0x108] ss:$40 sps:$4 sm:$0xff]  }
  0x22   : > { %1402 = vmatprep.subr.bf16.mxu0 %v3304_v28  ;;  %1444 = vmatpush1.bf16.msra.mxu1 %v3306_v29  ;;  %v3372_v17 = vld [vmem:[%s4466_s2 + $0x100] ss:$40 sps:$4 sm:$0xff]   ;;  %v3380_v18 = vld [vmem:[%s4466_s2 + $0x154] ss:$40 sps:$4 sm:$0xff]   ;;  %v3378_v21 = vld [vmem:[%s4466_s2 + $0x150] ss:$40 sps:$4 sm:$0xff]  }
  0x23   : > { %1445 = vmatprep.subr.bf16.mxu1 %v3308_v30  ;;  %v3383_v20 = vld [vmem:[%s4466_s2 + $0x15c] ss:$40 sps:$4 sm:$0xff]   ;;  %v3381_v23 = vld [vmem:[%s4466_s2 + $0x158] ss:$40 sps:$4 sm:$0xff]   ;;  %v3389_v24 = vld [vmem:[%s4466_s2 + $0x1ac] ss:$40 sps:$4 sm:$0xff]  }
  0x24   : > { %v3386_v22 = vld [vmem:[%s4466_s2 + $0x1a4] ss:$40 sps:$4 sm:$0xff]   ;;  %v3384_v25 = vld [vmem:[%s4466_s2 + $0x1a0] ss:$40 sps:$4 sm:$0xff]   ;;  %v3392_v26 = vld [vmem:[%s4466_s2 + $0x1f4] ss:$40 sps:$4 sm:$0xff]  }
  0x25   : > { %1403 = vmatpush1.bf16.msra.mxu0 %v3307_v31  ;;  %v3387_v27 = vld [vmem:[%s4466_s2 + $0x1a8] ss:$40 sps:$4 sm:$0xff]   ;;  %v3395_v28 = vld [vmem:[%s4466_s2 + $0x1fc] ss:$40 sps:$4 sm:$0xff]   ;;  %v3393_v31 = vld [vmem:[%s4466_s2 + $0x1f8] ss:$40 sps:$4 sm:$0xff]  }
  0x26   : > { %1404 = vmatprep.subr.bf16.mxu0 %v3310_v32  ;;  %1446 = vmatpush1.bf16.msra.mxu1 %v3312_v33  ;;  %v3390_v29 = vld [vmem:[%s4466_s2 + $0x1f0] ss:$40 sps:$4 sm:$0xff]   ;;  %v3398_v30 = vld [vmem:[%s4466_s2 + $0x244] ss:$40 sps:$4 sm:$0xff]   ;;  %v3396_v33 = vld [vmem:[%s4466_s2 + $0x240] ss:$40 sps:$4 sm:$0xff]  }
  0x27   : > { %1447 = vmatprep.subr.bf16.mxu1 %v3314_v34  ;;  %v3401_v32 = vld [vmem:[%s4466_s2 + $0x24c] ss:$40 sps:$4 sm:$0xff]   ;;  %v3431_v56 = vld [vmem:[%s4466_s2 + $0x3dc] ss:$40 sps:$4 sm:$0xff]   ;;  %v3435_v63 = vld [vmem:[%s4466_s2 + $0x428] ss:$40 sps:$4 sm:$0xff]  }
  0x28   : > { %v3404_v34 = vld [vmem:[%s4466_s2 + $0x294] ss:$40 sps:$4 sm:$0xff]   ;;  %v3434_v60 = vld [vmem:[%s4466_s2 + $0x424] ss:$40 sps:$4 sm:$0xff]   ;;  %vm2743_vm4 = vcmask 7168  }
  0x29   : > { %1405 = vmatpush1.bf16.msra.mxu0 %v3313_v35  ;;  %v3399_v35 = vld [vmem:[%s4466_s2 + $0x248] ss:$40 sps:$4 sm:$0xff]  }
  0x2a   : > { %1406 = vmatprep.subr.bf16.mxu0 %v3316_v36  ;;  %1448 = vmatpush1.bf16.msra.mxu1 %v3318_v37  ;;  %v3407_v36 = vld [vmem:[%s4466_s2 + $0x29c] ss:$40 sps:$4 sm:$0xff]   ;;  %v3402_v37 = vld [vmem:[%s4466_s2 + $0x290] ss:$40 sps:$4 sm:$0xff]  }
  0x2b   : > { %1449 = vmatprep.subr.bf16.mxu1 %v3320_v38  ;;  %v3410_v38 = vld [vmem:[%s4466_s2 + $0x2e4] ss:$40 sps:$4 sm:$0xff]  }
  0x2d   : > { %1407 = vmatpush1.bf16.msra.mxu0 %v3319_v39  ;;  %v3405_v39 = vld [vmem:[%s4466_s2 + $0x298] ss:$40 sps:$4 sm:$0xff]  }
  0x2e   : > { %1408 = vmatprep.subr.bf16.mxu0 %v3322_v40  ;;  %1450 = vmatpush1.bf16.msra.mxu1 %v3324_v41  ;;  %v3413_v40 = vld [vmem:[%s4466_s2 + $0x2ec] ss:$40 sps:$4 sm:$0xff]   ;;  %v3408_v41 = vld [vmem:[%s4466_s2 + $0x2e0] ss:$40 sps:$4 sm:$0xff]  }
  0x2f   : > { %1451 = vmatprep.subr.bf16.mxu1 %v3326_v42  ;;  %v3411_v42 = vld [vmem:[%s4466_s2 + $0x2e8] ss:$40 sps:$4 sm:$0xff]  }
  0x31   : > { %1409 = vmatpush1.bf16.msra.mxu0 %v3325_v44  ;;  %v3416_v44 = vld [vmem:[%s4466_s2 + $0x334] ss:$40 sps:$4 sm:$0xff]  }
  0x32   : > { %1410 = vmatprep.subr.bf16.mxu0 %v3328_v45  ;;  %1452 = vmatpush1.bf16.msra.mxu1 %v3330_v46  ;;  %v3414_v45 = vld [vmem:[%s4466_s2 + $0x330] ss:$40 sps:$4 sm:$0xff]   ;;  %v3419_v46 = vld [vmem:[%s4466_s2 + $0x33c] ss:$40 sps:$4 sm:$0xff]  }
  0x33   : > { %1453 = vmatprep.subr.bf16.mxu1 %v3332_v47  ;;  %v3417_v47 = vld [vmem:[%s4466_s2 + $0x338] ss:$40 sps:$4 sm:$0xff]  }
  0x35   : > { %1411 = vmatpush1.bf16.msra.mxu0 %v3331_v48  ;;  %v3422_v48 = vld [vmem:[%s4466_s2 + $0x384] ss:$40 sps:$4 sm:$0xff]  }
  0x36   : > { %1412 = vmatprep.subr.bf16.mxu0 %v3334_v49  ;;  %1454 = vmatpush1.bf16.msra.mxu1 %v3336_v50  ;;  %v3420_v49 = vld [vmem:[%s4466_s2 + $0x380] ss:$40 sps:$4 sm:$0xff]   ;;  %v3425_v50 = vld [vmem:[%s4466_s2 + $0x38c] ss:$40 sps:$4 sm:$0xff]  }
  0x37   : > { %1455 = vmatprep.subr.bf16.mxu1 %v3338_v51  ;;  %v3428_v51 = vld [vmem:[%s4466_s2 + $0x3d4] ss:$40 sps:$4 sm:$0xff]  }
  0x39   : > { %1413 = vmatpush1.bf16.msra.mxu0 %v3337_v52  ;;  %v3423_v52 = vld [vmem:[%s4466_s2 + $0x388] ss:$40 sps:$4 sm:$0xff]  }
  0x3a   : > { %1414 = vmatprep.subr.bf16.mxu0 %v3340_v53  ;;  %1456 = vmatpush1.bf16.msra.mxu1 %v3342_v54  ;;  %v562_v53 = vld [vmem:[%s4466_s2 + $0x470] sm:$0x77]  ;;  %v563_v54 = vld [vmem:[%s4466_s2 + $0x478] sm:$0x77] }
  0x3b   : > { %1457 = vmatprep.subr.bf16.mxu1 %v3344_v57  ;;  %v3429_v57 = vld [vmem:[%s4466_s2 + $0x3d8] ss:$40 sps:$4 sm:$0xff]   ;;  %v2972_v58 = vcombine.low %v562_v53, %v562_v53 }
  0x3d   : > { %1415 = vmatpush1.bf16.msra.mxu0 %v3343_v55  ;;  %v3426_v55 = vld [vmem:[%s4466_s2 + $0x3d0] ss:$40 sps:$4 sm:$0xff]  }
  0x3e   : > { %2978 = vmatprep.subr.msk.bf16.mxu0 %vm1357_vm1, %v2969_v59  ;;  %1458 = vmatpush1.bf16.msra.mxu1 %v3347_v61  ;;  %v2974_v59 = vcombine.low %v563_v54, %v563_v54  ;;  %v3432_v61 = vld [vmem:[%s4466_s2 + $0x420] ss:$40 sps:$4 sm:$0xff]  }
  0x3f   : > { %2980 = vmatprep.subr.msk.bf16.mxu1 %vm1357_vm1, %v2971_v62  ;;  %v3437_v62 = vld [vmem:[%s4466_s2 + $0x42c] ss:$40 sps:$4 sm:$0xff]  }
  0x41   : > { %1417 = vmatpush1.bf16.msra.mxu0 %v1359_v0  ;;  %v1371_v0 = vsel %vm1357_vm1, %v2972_v58, 0  ;;  %v3521_v58 = vld [vmem:[%s4468_s4 + $0x140] sm:$0xff]  }
  0x42   : > { %1474 = vmatprep.subr.bf16.mxu0 %v3356_v1  ;;  %1460 = vmatpush1.bf16.msra.mxu1 %v1365_v3  ;;  %v1377_v1 = vsel %vm1357_vm1, %v2974_v59, 0  ;;  %v2973_v3 = vcombine.high %v562_v53, %v562_v53  ;;  %v564_v53 = vld [vmem:[%s4466_s2 + $0x480] sm:$0x77] }
  0x43   : > { %1517 = vmatprep.subr.bf16.mxu1 %v3359_v4  ;;  %v2975_v4 = vcombine.high %v563_v54, %v563_v54  ;;  %v3481_v54 = vld [vmem:[%s4466_s2 + $0x430] ss:$40 sps:$4 sm:$0xff]   ;;  %v3522_v59 = vld [vmem:[%s4468_s4 + $0x100] sm:$0xff]  }
  0x44   : > { %1421 = vmatmul.mubr.bf16.vlgmr.msra.gmra.mrb[0].mxu0 %v3849_v2 }
  0x45   : > { %1475 = vmatpush1.bf16.msra.mxu0 %v3354_v5  ;;  %2983 = vmatprep.mubr.msk.bf16.mxu0 %vm1353_vm0, %v3789_v43  ;;  %v3444_v5 = vld [vmem:[%s4466_s2 + $0x24] ss:$40 sps:$4 sm:$0xff]  }
  0x46   : > { %1464 = vmatmul.mubr.bf16.vlgmr.msra.gmra.mrb[0].mxu1 %v3849_v2  ;;  %1476 = vmatprep.subr.bf16.mxu0 %v3362_v6  ;;  %v3442_v6 = vld [vmem:[%s4466_s2 + $0x20] ss:$40 sps:$4 sm:$0xff]  }
  0x47   : > { %1518 = vmatpush1.bf16.msra.mxu1 %v3357_v7  ;;  %2985 = vmatprep.mubr.msk.bf16.mxu1 %vm1353_vm0, %v3789_v43  ;;  %v3447_v7 = vld [vmem:[%s4466_s2 + $0x74] ss:$40 sps:$4 sm:$0xff]  }
  0x48   : > { %1519 = vmatprep.subr.bf16.mxu1 %v3365_v8  ;;  %v3486_v8 = vld [vmem:[%s4469_s5] sm:$0xff]  }
  0x49   : > { %1477 = vmatpush1.bf16.msra.mxu0 %v3360_v9  ;;  %v3445_v9 = vld [vmem:[%s4466_s2 + $0x70] ss:$40 sps:$4 sm:$0xff]  }
  0x4a   : > { %1478 = vmatprep.subr.bf16.mxu0 %v3368_v10  ;;  %v3450_v10 = vld [vmem:[%s4466_s2 + $0xc4] ss:$40 sps:$4 sm:$0xff]  }
  0x4b   : > { %1520 = vmatpush1.bf16.msra.mxu1 %v3363_v11  ;;  %v3577_v11 = vmov 0.0  }
  0x4c   : > { %1521 = vmatprep.subr.bf16.mxu1 %v3371_v12  ;;  %v3487_v12 = vld [vmem:[%s4469_s5 + $0x8] sm:$0xff]  }
  0x4d   : > { %1479 = vmatpush1.bf16.msra.mxu0 %v3366_v13  ;;  %v3488_v13 = vld [vmem:[%s4468_s4 + $0x40] sm:$0xff]  }
  0x4e   : > { %1480 = vmatprep.subr.bf16.mxu0 %v3374_v14  ;;  %v3448_v14 = vld [vmem:[%s4466_s2 + $0xc0] ss:$40 sps:$4 sm:$0xff]  }
  0x4f   : > { %1522 = vmatpush1.bf16.msra.mxu1 %v3369_v15  ;;  %v3489_v15 = vld [vmem:[%s3989_s24] sm:$0xff]  }
  0x50   : > { %1523 = vmatprep.subr.bf16.mxu1 %v3377_v16  ;;  %v3490_v16 = vld [vmem:[%s4468_s4] sm:$0xff]  }
  0x51   : > { %1481 = vmatpush1.bf16.msra.mxu0 %v3372_v17  ;;  %v3491_v17 = vld [vmem:[%s4468_s4 + $0x48] sm:$0xff]  }
  0x52   : > { %1482 = vmatprep.subr.bf16.mxu0 %v3380_v18  ;;  %v3451_v18 = vld [vmem:[%s4466_s2 + $0x110] ss:$40 sps:$4 sm:$0xff]  }
  0x53   : > { %1524 = vmatpush1.bf16.msra.mxu1 %v3375_v19  ;;  %v3456_v19 = vld [vmem:[%s4466_s2 + $0x164] ss:$40 sps:$4 sm:$0xff]  }
  0x54   : > { %1525 = vmatprep.subr.bf16.mxu1 %v3383_v20  ;;  %v3492_v20 = vld [vmem:[%s4468_s4 + $0x8] sm:$0xff]  }
  0x55   : > { %1483 = vmatpush1.bf16.msra.mxu0 %v3378_v21  ;;  %v3493_v21 = vld [vmem:[%s4468_s4 + $0x50] sm:$0xff]  }
  0x56   : > { %1484 = vmatprep.subr.bf16.mxu0 %v3386_v22  ;;  %v3454_v22 = vld [vmem:[%s4466_s2 + $0x160] ss:$40 sps:$4 sm:$0xff]  }
  0x57   : > { %1526 = vmatpush1.bf16.msra.mxu1 %v3381_v23  ;;  %v3459_v23 = vld [vmem:[%s4466_s2 + $0x1b4] ss:$40 sps:$4 sm:$0xff]  }
  0x58   : > { %1527 = vmatprep.subr.bf16.mxu1 %v3389_v24  ;;  %v3494_v24 = vld [vmem:[%s4468_s4 + $0x10] sm:$0xff]  }
  0x59   : > { %1485 = vmatpush1.bf16.msra.mxu0 %v3384_v25  ;;  %v3495_v25 = vld [vmem:[%s4468_s4 + $0x58] sm:$0xff]  }
  0x5a   : > { %1486 = vmatprep.subr.bf16.mxu0 %v3392_v26  ;;  %v3457_v26 = vld [vmem:[%s4466_s2 + $0x1b0] ss:$40 sps:$4 sm:$0xff]  }
  0x5b   : > { %1528 = vmatpush1.bf16.msra.mxu1 %v3387_v27  ;;  %v3462_v27 = vld [vmem:[%s4466_s2 + $0x204] ss:$40 sps:$4 sm:$0xff]  }
  0x5c   : > { %1529 = vmatprep.subr.bf16.mxu1 %v3395_v28  ;;  %v3496_v28 = vld [vmem:[%s4468_s4 + $0x18] sm:$0xff]  }
  0x5d   : > { %1487 = vmatpush1.bf16.msra.mxu0 %v3390_v29  ;;  %v3497_v29 = vld [vmem:[%s4468_s4 + $0x60] sm:$0xff]  }
  0x5e   : > { %1488 = vmatprep.subr.bf16.mxu0 %v3398_v30  ;;  %v3460_v30 = vld [vmem:[%s4466_s2 + $0x200] ss:$40 sps:$4 sm:$0xff]  }
  0x5f   : > { %1530 = vmatpush1.bf16.msra.mxu1 %v3393_v31  ;;  %v3465_v31 = vld [vmem:[%s4466_s2 + $0x254] ss:$40 sps:$4 sm:$0xff]  }
  0x60   : > { %1531 = vmatprep.subr.bf16.mxu1 %v3401_v32  ;;  %v3463_v32 = vld [vmem:[%s4466_s2 + $0x250] ss:$40 sps:$4 sm:$0xff]  }
  0x61   : > { %1489 = vmatpush1.bf16.msra.mxu0 %v3396_v33  ;;  %v3498_v33 = vld [vmem:[%s4468_s4 + $0x20] sm:$0xff]  }
  0x62   : > { %1490 = vmatprep.subr.bf16.mxu0 %v3404_v34  ;;  %v3468_v34 = vld [vmem:[%s4466_s2 + $0x2a4] ss:$40 sps:$4 sm:$0xff]  }
  0x63   : > { %1532 = vmatpush1.bf16.msra.mxu1 %v3399_v35  ;;  %v3499_v35 = vld [vmem:[%s4468_s4 + $0x68] sm:$0xff]  }
  0x64   : > { %1533 = vmatprep.subr.bf16.mxu1 %v3407_v36  ;;  %v3466_v36 = vld [vmem:[%s4466_s2 + $0x2a0] ss:$40 sps:$4 sm:$0xff]  }
  0x65   : > { %1491 = vmatpush1.bf16.msra.mxu0 %v3402_v37  ;;  %v3500_v37 = vld [vmem:[%s4468_s4 + $0x28] sm:$0xff]  }
  0x66   : > { %1492 = vmatprep.subr.bf16.mxu0 %v3410_v38  ;;  %v3471_v38 = vld [vmem:[%s4466_s2 + $0x2f4] ss:$40 sps:$4 sm:$0xff]  }
  0x67   : > { %1534 = vmatpush1.bf16.msra.mxu1 %v3405_v39  ;;  %v3501_v39 = vld [vmem:[%s4468_s4 + $0x70] sm:$0xff]  }
  0x68   : > { %1535 = vmatprep.subr.bf16.mxu1 %v3413_v40  ;;  %v3469_v40 = vld [vmem:[%s4466_s2 + $0x2f0] ss:$40 sps:$4 sm:$0xff]  }
  0x69   : > { %1493 = vmatpush1.bf16.msra.mxu0 %v3408_v41  ;;  %v3502_v41 = vld [vmem:[%s4468_s4 + $0x30] sm:$0xff]  }
  0x6a   : > { %1494 = vmatprep.subr.bf16.mxu0 %v3416_v44  ;;  %v3503_v44 = vld [vmem:[%s4468_s4 + $0x78] sm:$0xff]  }
  0x6b   : > { %1536 = vmatpush1.bf16.msra.mxu1 %v3411_v42  ;;  %v3474_v42 = vld [vmem:[%s4466_s2 + $0x344] ss:$40 sps:$4 sm:$0xff]  }
  0x6c   : > { %1537 = vmatprep.subr.bf16.mxu1 %v3419_v46  ;;  %v3504_v46 = vld [vmem:[%s4468_s4 + $0x38] sm:$0xff]  }
  0x6d   : > { %1495 = vmatpush1.bf16.msra.mxu0 %v3414_v45  ;;  %v3472_v45 = vld [vmem:[%s4466_s2 + $0x340] ss:$40 sps:$4 sm:$0xff]  }
  0x6e   : > { %1496 = vmatprep.subr.bf16.mxu0 %v3422_v48  ;;  %v3477_v48 = vld [vmem:[%s4466_s2 + $0x394] ss:$40 sps:$4 sm:$0xff]  }
  0x6f   : > { %1538 = vmatpush1.bf16.msra.mxu1 %v3417_v47  ;;  %v3505_v47 = vld [vmem:[%s4468_s4 + $0xc0] sm:$0xff]  }
  0x70   : > { %1539 = vmatprep.subr.bf16.mxu1 %v3425_v50  ;;  %v3480_v50 = vld [vmem:[%s4466_s2 + $0x3e4] ss:$40 sps:$4 sm:$0xff]  }
  0x71   : > { %1497 = vmatpush1.bf16.msra.mxu0 %v3420_v49  ;;  %v3475_v49 = vld [vmem:[%s4466_s2 + $0x390] ss:$40 sps:$4 sm:$0xff]  }
  0x72   : > { %1498 = vmatprep.subr.bf16.mxu0 %v3428_v51  ;;  %v3478_v51 = vld [vmem:[%s4466_s2 + $0x3e0] ss:$40 sps:$4 sm:$0xff]  }
  0x73   : > { %1540 = vmatpush1.bf16.msra.mxu1 %v3423_v52  ;;  %v3483_v52 = vld [vmem:[%s4466_s2 + $0x434] ss:$40 sps:$4 sm:$0xff]  }
  0x74   : > { %1541 = vmatprep.subr.bf16.mxu1 %v3431_v56  ;;  %v2976_v56 = vcombine.low %v564_v53, %v564_v53 }
  0x75   : > { %1499 = vmatpush1.bf16.msra.mxu0 %v3426_v55  ;;  %v2977_v55 = vcombine.high %v564_v53, %v564_v53  ;;  %v3509_v53 = vld [vmem:[%s4468_s4 + $0xd0] sm:$0xff]  }
  0x76   : > { %1500 = vmatprep.subr.bf16.mxu0 %v3434_v60  ;;  %v3524_v60 = vld [vmem:[%s4468_s4 + $0x148] sm:$0xff]  }
  0x77   : > { %1542 = vmatpush1.bf16.msra.mxu1 %v3429_v57  ;;  %v1383_v57 = vsel %vm1357_vm1, %v2976_v56, 0  ;;  %v3512_v56 = vld [vmem:[%s4468_s4 + $0x98] sm:$0xff]  }
  0x78   : > { %1543 = vmatprep.subr.bf16.mxu1 %v3437_v62  ;;  %v3530_v62 = vld [vmem:[%s4468_s4 + $0x110] sm:$0xff]  }
  0x79   : > { %1501 = vmatpush1.bf16.msra.mxu0 %v3432_v61  ;;  %v3526_v61 = vld [vmem:[%s4468_s4 + $0x108] sm:$0xff]  }
  0x7a   : > { %2982 = vmatprep.subr.msk.bf16.mxu0 %vm1357_vm1, %v2973_v3  ;;  %v3538_v3 = vld [vmem:[%s4468_s4 + $0x120] sm:$0xff]  }
  0x7b   : > { %1544 = vmatpush1.bf16.msra.mxu1 %v3435_v63  ;;  %v3532_v63 = vld [vmem:[%s4468_s4 + $0x158] sm:$0xff]  }
  0x7c   : > { %2984 = vmatprep.subr.msk.bf16.mxu1 %vm1357_vm1, %v2975_v4  ;;  %v3540_v4 = vld [vmem:[%s4468_s4 + $0x168] sm:$0xff]  }
  0x7d   : > { %1503 = vmatpush1.bf16.msra.mxu0 %v1371_v0  ;;  %v3534_v0 = vld [vmem:[%s4468_s4 + $0x118] sm:$0xff]  }
  0x7e   : > { %1560 = vmatprep.subr.bf16.mxu0 %v3444_v5  ;;  %v3542_v5 = vld [vmem:[%s4468_s4 + $0x128] sm:$0xff]  }
  0x7f   : > { %1546 = vmatpush1.bf16.msra.mxu1 %v1377_v1  ;;  %v3536_v1 = vld [vmem:[%s4468_s4 + $0x160] sm:$0xff]  }
  0x80   : > { %1507 = vmatmul.mubr.bf16.vlgmr.msra.gmra.mrb[4].mxu0 %v3849_v2  ;;  %3207 = vmatprep.subr.bf16.mxu1 %v3577_v11 }
  0x81   : > { %1561 = vmatpush1.bf16.msra.mxu0 %v3442_v6  ;;  %2987 = vmatprep.mubr.msk.bf16.mxu0 %vm1353_vm0, %v3789_v43  ;;  %v3453_v43 = vld [vmem:[%s4466_s2 + $0x114] ss:$40 sps:$4 sm:$0xff]  }
  0x82   : > { %1550 = vmatmul.mubr.bf16.vlgmr.msra.gmra.mrb[4].mxu1 %v3849_v2  ;;  %1562 = vmatprep.subr.bf16.mxu0 %v3447_v7  ;;  %v3544_v6 = vld [vmem:[%s4468_s4 + $0x170] sm:$0xff]  }
  0x83   : > { %3208 = vmatpush3.bf16.msra.mxu1 %v3486_v8  ;;  %3211 = vmatprep.mubr.msk.bf16.mxu1 %vm3578_vm3, %v3577_v11  ;;  %v3546_v7 = vld [vmem:[%s4468_s4 + $0x130] sm:$0xff]   ;;  %v3548_v8 = vld [vmem:[%s4468_s4 + $0x178] sm:$0xff]  }
  0x84   : > { %3209 = vmatprep.subr.bf16.mxu1 %v3577_v11  ;;  %v569_v11 = vlaneseq }
  0x85   : > { %1563 = vmatpush1.bf16.msra.mxu0 %v3445_v9  ;;  %v3550_v9 = vld [vmem:[%s4468_s4 + $0x138] sm:$0xff]  }
  0x86   : > { %1564 = vmatprep.subr.bf16.mxu0 %v3450_v10  ;;  %v3553_v10 = vld [vmem:[%s4468_s4 + $0x240] sm:$0xff]  }
  0x87   : > { %3210 = vmatpush3.bf16.msra.mxu1 %v3487_v12  ;;  %v4244_v12 = vshrl.u32 %v569_v11, 7 }
  0x88   : > { %3085 = vmatprep.subr.bf16.mxu1 %v3488_v13 }
  0x89   : > { %1565 = vmatpush1.bf16.msra.mxu0 %v3448_v14  ;;  %v571_v13 = vsub.s32 0, %v4244_v12  ;;  %v4250_v14 = vld [vmem:[%s4467_s3] sm:$0xff]  ;;  %v591_v11 = vsub.s32 5, %v4244_v12 }
  0x8a   : > { %1566 = vmatprep.subr.bf16.mxu0 %v3453_v43  ;;  %3212 = vmatmul.mubr.msk.bf16.vlgmr.msra.gmra.mrb[8].mxu1 %vm1816_vm2, %v3489_v15  ;;  %v575_v43 = vsub.s32 1, %v4244_v12  ;;  %v579_v15 = vsub.s32 2, %v4244_v12 }
  0x8b   : > { %3086 = vmatpush3.bf16.msra.mxu1 %v3490_v16  ;;  %v583_v16 = vsub.s32 3, %v4244_v12 }
  0x8c   : > { %3087 = vmatprep.subr.bf16.mxu1 %v3491_v17  ;;  %v572_v17 = vrot.slane %v4250_v14, %v571_v13 }
  0x8d   : > { %1567 = vmatpush1.bf16.msra.mxu0 %v3451_v18  ;;  %v576_v18 = vrot.slane %v4250_v14, %v575_v43 }
  0x8e   : > { %1568 = vmatprep.subr.bf16.mxu0 %v3456_v19  ;;  %v580_v19 = vrot.slane %v4250_v14, %v579_v15  ;;  %v595_v15 = vsub.s32 6, %v4244_v12 }
  0x8f   : > { %3088 = vmatpush3.bf16.msra.mxu1 %v3492_v20 }
  0x90   : > { %3089 = vmatprep.subr.bf16.mxu1 %v3493_v21  ;;  %v584_v21 = vrot.slane %v4250_v14, %v583_v16  ;;  %v3541_v16 = vld [vmem:[%s4468_s4 + $0x1a0] sm:$0xff]  }
  0x91   : > { %1569 = vmatpush1.bf16.msra.mxu0 %v3454_v22 }
  0x92   : > { %1570 = vmatprep.subr.bf16.mxu0 %v3459_v23 }
  0x93   : > { %3090 = vmatpush3.bf16.msra.mxu1 %v3494_v24 }
  0x94   : > { %3091 = vmatprep.subr.bf16.mxu1 %v3495_v25 }
  0x95   : > { %1571 = vmatpush1.bf16.msra.mxu0 %v3457_v26 }
  0x96   : > { %1572 = vmatprep.subr.bf16.mxu0 %v3462_v27 }
  0x97   : > { %3092 = vmatpush3.bf16.msra.mxu1 %v3496_v28 }
  0x98   : > { %3093 = vmatprep.subr.bf16.mxu1 %v3497_v29 }
  0x99   : > { %1573 = vmatpush1.bf16.msra.mxu0 %v3460_v30 }
  0x9a   : > { %1574 = vmatprep.subr.bf16.mxu0 %v3465_v31 }
  0x9b   : > { %3094 = vmatpush3.bf16.msra.mxu1 %v3498_v33 }
  0x9c   : > { %3095 = vmatprep.subr.bf16.mxu1 %v3499_v35 }
  0x9d   : > { %1575 = vmatpush1.bf16.msra.mxu0 %v3463_v32 }
  0x9e   : > { %1576 = vmatprep.subr.bf16.mxu0 %v3468_v34 }
  0x9f   : > { %3096 = vmatpush3.bf16.msra.mxu1 %v3500_v37 }
  0xa0   : > { %3097 = vmatprep.subr.bf16.mxu1 %v3501_v39 }
  0xa1   : > { %1577 = vmatpush1.bf16.msra.mxu0 %v3466_v36 }
  0xa2   : > { %1578 = vmatprep.subr.bf16.mxu0 %v3471_v38 }
  0xa3   : > { %3098 = vmatpush3.bf16.msra.mxu1 %v3502_v41 }
  0xa4   : > { %3099 = vmatprep.subr.bf16.mxu1 %v3503_v44 }
  0xa5   : > { %1579 = vmatpush1.bf16.msra.mxu0 %v3469_v40 }
  0xa6   : > { %1580 = vmatprep.subr.bf16.mxu0 %v3474_v42 }
  0xa7   : > { %3100 = vmatpush3.bf16.msra.mxu1 %v3504_v46 }
  0xa8   : > { %3107 = vmatprep.subr.bf16.mxu1 %v3505_v47  ;;  %v3506_v47 = vld [vmem:[%s4468_s4 + $0x80] sm:$0xff]  }
  0xa9   : > { %1581 = vmatpush1.bf16.msra.mxu0 %v3472_v45 }
  0xaa   : > { %1582 = vmatprep.subr.bf16.mxu0 %v3477_v48 }
  0xad   : > { %1583 = vmatpush1.bf16.msra.mxu0 %v3475_v49  ;;  %v3507_v49 = vld [vmem:[%s4468_s4 + $0xc8] sm:$0xff]  }
  0xae   : > { %1584 = vmatprep.subr.bf16.mxu0 %v3480_v50 }
  0xb1   : > { %1585 = vmatpush1.bf16.msra.mxu0 %v3478_v51 }
  0xb2   : > { %1586 = vmatprep.subr.bf16.mxu0 %v3483_v52  ;;  %v3508_v52 = vld [vmem:[%s4468_s4 + $0x88] sm:$0xff]  }
  0xb5   : > { %1587 = vmatpush1.bf16.msra.mxu0 %v3481_v54  ;;  %v3510_v54 = vld [vmem:[%s4468_s4 + $0x90] sm:$0xff]  }
  0xb6   : > { %2986 = vmatprep.subr.msk.bf16.mxu0 %vm1357_vm1, %v2977_v55  ;;  %v3511_v55 = vld [vmem:[%s4468_s4 + $0xd8] sm:$0xff]  }
  0xb9   : > { %1589 = vmatpush1.bf16.msra.mxu0 %v1383_v57  ;;  %v3513_v57 = vld [vmem:[%s4468_s4 + $0xe0] sm:$0xff]  }
  0xba   : > { %3129 = vmatprep.subr.bf16.mxu0 %v3521_v58  ;;  %v3514_v58 = vld [vmem:[%s4468_s4 + $0xa0] sm:$0xff]  }
  0xbc   : > { %1593 = vmatmul.mubr.bf16.vlgmr.msra.gmra.mrb[8].mxu0 %v3849_v2  ;;  %v3528_v2 = vld [vmem:[%s4468_s4 + $0x150] sm:$0xff]  }
  0xbd   : > { %3130 = vmatpush3.bf16.msra.mxu0 %v3522_v59  ;;  %v3515_v59 = vld [vmem:[%s4468_s4 + $0xe8] sm:$0xff]  }
  0xbe   : > { %3131 = vmatprep.subr.bf16.mxu0 %v3524_v60  ;;  %v3516_v60 = vld [vmem:[%s4468_s4 + $0xa8] sm:$0xff]  }
  0xc1   : > { %3132 = vmatpush3.bf16.msra.mxu0 %v3526_v61  ;;  %v3517_v61 = vld [vmem:[%s4468_s4 + $0xf0] sm:$0xff]  }
  0xc2   : > { %3133 = vmatprep.subr.bf16.mxu0 %v3528_v2  ;;  %v3518_v2 = vld [vmem:[%s4468_s4 + $0xb0] sm:$0xff]  }
  0xc5   : > { %3134 = vmatpush3.bf16.msra.mxu0 %v3530_v62  ;;  %v3519_v62 = vld [vmem:[%s4468_s4 + $0xf8] sm:$0xff]  }
  0xc6   : > { %3135 = vmatprep.subr.bf16.mxu0 %v3532_v63  ;;  %v3520_v63 = vld [vmem:[%s4468_s4 + $0xb8] sm:$0xff]  }
  0xc9   : > { %3136 = vmatpush3.bf16.msra.mxu0 %v3534_v0  ;;  %v3523_v0 = vld [vmem:[%s4468_s4 + $0x1c0] sm:$0xff]  }
  0xca   : > { %3137 = vmatprep.subr.bf16.mxu0 %v3536_v1  ;;  %v3525_v1 = vld [vmem:[%s4468_s4 + $0x180] sm:$0xff]  }
  0xcd   : > { %3138 = vmatpush3.bf16.msra.mxu0 %v3538_v3  ;;  %v3527_v3 = vld [vmem:[%s4468_s4 + $0x1c8] sm:$0xff]  }
  0xce   : > { %3139 = vmatprep.subr.bf16.mxu0 %v3540_v4  ;;  %v3529_v4 = vld [vmem:[%s4468_s4 + $0x188] sm:$0xff]  }
  0xd1   : > { %3140 = vmatpush3.bf16.msra.mxu0 %v3542_v5  ;;  %v3531_v5 = vld [vmem:[%s4468_s4 + $0x1d0] sm:$0xff]  }
  0xd2   : > { %3141 = vmatprep.subr.bf16.mxu0 %v3544_v6  ;;  %v3533_v6 = vld [vmem:[%s4468_s4 + $0x190] sm:$0xff]  }
  0xd5   : > { %3142 = vmatpush3.bf16.msra.mxu0 %v3546_v7  ;;  %v3535_v7 = vld [vmem:[%s4468_s4 + $0x1d8] sm:$0xff]  }
  0xd6   : > { %3143 = vmatprep.subr.bf16.mxu0 %v3548_v8  ;;  %v3537_v8 = vld [vmem:[%s4468_s4 + $0x198] sm:$0xff]  }
  0xd9   : > { %3144 = vmatpush3.bf16.msra.mxu0 %v3550_v9  ;;  %v3539_v9 = vld [vmem:[%s4468_s4 + $0x1e0] sm:$0xff]  }
  0xda   : > { %3173 = vmatprep.subr.bf16.mxu0 %v3553_v10  ;;  %v587_v10 = vsub.s32 4, %v4244_v12 }
 0x117   : > { %v1422_v20 = vpop.f32.mrb[0].mxu0 }
 0x118   : > { %v1423_v22 = vadd.f32 %v1422_v20, %v572_v17  ;;  %v1424_v23 = vpop.f32.mrb[1].mxu0  ;;  %v592_v20 = vrot.slane %v4250_v14, %v591_v11  ;;  %v566_v11 = vld [vmem:[%s4467_s3 + $0x8] sm:$0x3] }
 0x119   : > { %v1425_v24 = vadd.f32 %v1424_v23, %v576_v18  ;;  %v1426_v25 = vpop.f32.mrb[2].mxu0  ;;  %v1465_v26 = vpop.f32.mrb[0].mxu1  ;;  %v3545_v23 = vld [vmem:[%s4468_s4 + $0x1a8] sm:$0xff]  }
 0x11a   : > { %v1603_v27 = vmax.f32 %v1423_v22, 0.0  ;;  %v1427_v28 = vadd.f32 %v1426_v25, %v572_v17  ;;  %v1428_v29 = vpop.f32.mrb[3].mxu0  ;;  %v1466_v30 = vadd.f32 %v1465_v26, %v580_v19  ;;  %v1467_v31 = vpop.f32.mrb[1].mxu1  ;;  %v599_v17 = vsub.s32 7, %v4244_v12  ;;  %v2557_v12 = vld [vmem:[%s4471_s7] sm:$0xff] }
 0x11b   : > { %v1429_v32 = vadd.f32 %v1428_v29, %v576_v18  ;;  %v1468_v33 = vadd.f32 %v1467_v31, %v584_v21  ;;  %v1469_v34 = vpop.f32.mrb[2].mxu1  ;;  %v1604_v39 = vmax.f32 %v1425_v24, 0.0  ;;  %v588_v18 = vrot.slane %v4250_v14, %v587_v10  ;;  %v3568_v10 = vld [vmem:[%s4468_s4 + $0x238] sm:$0xff]  }
 0x11c   : > { %v1613_v35 = vmax.f32 %v1427_v28, 0.0  ;;  %v1605_v36 = vmax.f32 %v1466_v30, 0.0  ;;  %v1470_v37 = vadd.f32 %v1469_v34, %v580_v19  ;;  %v1471_v38 = vpop.f32.mrb[3].mxu1  ;;  %v3543_v19 = vld [vmem:[%s4468_s4 + $0x1e8] sm:$0xff]   ;;  %v600_v24 = vrot.slane %v4250_v14, %v599_v17 }
 0x11d   : > { %v1614_v40 = vmax.f32 %v1429_v32, 0.0  ;;  %v1606_v41 = vmax.f32 %v1468_v33, 0.0  ;;  %v1472_v42 = vadd.f32 %v1471_v38, %v584_v21  ;;  %v596_v21 = vrot.slane %v4250_v14, %v595_v15  ;;  %v3549_v14 = vld [vmem:[%s4468_s4 + $0x1b0] sm:$0xff]  }
 0x11e   : > { %v1623_v44 = vpack.c.bf16 %v1613_v35, %v1603_v27  ;;  %v1615_v45 = vmax.f32 %v1470_v37, 0.0  ;;  %v3547_v27 = vld [vmem:[%s4468_s4 + $0x1f0] sm:$0xff]   ;;  %v604_v15 = vrot.slane %v566_v11, %v571_v13  ;;  %v2558_v13 = vld [vmem:[%s4471_s7 + $0x8] sm:$0xff] }
 0x11f   : > { %v1624_v46 = vpack.c.bf16 %v1614_v40, %v1604_v39  ;;  %v1616_v48 = vmax.f32 %v1472_v42, 0.0 }
 0x120   : > { %v1625_v50 = vpack.c.bf16 %v1615_v45, %v1605_v36 }
 0x121   : > { %2373 = vmatprep.mubr.bf16.mxu1 %v1624_v46  ;;  %v1626_v51 = vpack.c.bf16 %v1616_v48, %v1606_v41 }
 0x122   : > { %2374 = vmatmul.mubr.bf16.vlgmr.msra.gmra.mrb[12].mxu1 %v1623_v44  ;;  %v3551_v44 = vld [vmem:[%s4468_s4 + $0x1f8] sm:$0xff]  }
 0x123   : > { %3108 = vmatpush3.bf16.msra.mxu1 %v3506_v47  ;;  %2414 = vmatprep.mubr.bf16.mxu1 %v1626_v51 }
 0x124   : > { %3109 = vmatprep.subr.bf16.mxu1 %v3507_v49 }
 0x127   : > { %3110 = vmatpush3.bf16.msra.mxu1 %v3508_v52 }
 0x128   : > { %3111 = vmatprep.subr.bf16.mxu1 %v3509_v53  ;;  %v3552_v53 = vld [vmem:[%s4468_s4 + $0x1b8] sm:$0xff]  }
 0x12b   : > { %3112 = vmatpush3.bf16.msra.mxu1 %v3510_v54 }
 0x12c   : > { %3113 = vmatprep.subr.bf16.mxu1 %v3511_v55  ;;  %v3554_v55 = vld [vmem:[%s4468_s4 + $0x200] sm:$0xff]  }
 0x12f   : > { %3114 = vmatpush3.bf16.msra.mxu1 %v3512_v56 }
 0x130   : > { %3115 = vmatprep.subr.bf16.mxu1 %v3513_v57  ;;  %v3555_v57 = vld [vmem:[%s4468_s4 + $0x248] sm:$0xff]  }
 0x133   : > { %3116 = vmatpush3.bf16.msra.mxu1 %v3514_v58 }
 0x134   : > { %3117 = vmatprep.subr.bf16.mxu1 %v3515_v59 }
 0x137   : > { %3118 = vmatpush3.bf16.msra.mxu1 %v3516_v60 }
 0x138   : > { %3119 = vmatprep.subr.bf16.mxu1 %v3517_v61  ;;  %v3556_v61 = vld [vmem:[%s4468_s4 + $0x208] sm:$0xff]  }
 0x13b   : > { %3120 = vmatpush3.bf16.msra.mxu1 %v3518_v2 }
 0x13c   : > { %3121 = vmatprep.subr.bf16.mxu1 %v3519_v62  ;;  %v3557_v62 = vld [vmem:[%s4468_s4 + $0x250] sm:$0xff]  }
 0x13f   : > { %3122 = vmatpush3.bf16.msra.mxu1 %v3520_v63  ;;  %v3558_v63 = vld [vmem:[%s4468_s4 + $0x210] sm:$0xff]  }
 0x140   : > { %3151 = vmatprep.subr.bf16.mxu1 %v3523_v0  ;;  %v3559_v0 = vld [vmem:[%s4468_s4 + $0x258] sm:$0xff]  }
 0x142   : > { %2415 = vmatmul.mubr.bf16.vlgmr.msra.gmra.mrb[16].mxu1 %v1625_v50 }
 0x143   : > { %3152 = vmatpush3.bf16.msra.mxu1 %v3525_v1  ;;  %v3560_v1 = vld [vmem:[%s4468_s4 + $0x218] sm:$0xff]  }
 0x144   : > { %3153 = vmatprep.subr.bf16.mxu1 %v3527_v3  ;;  %v3561_v3 = vld [vmem:[%s4468_s4 + $0x260] sm:$0xff]  }
 0x147   : > { %3154 = vmatpush3.bf16.msra.mxu1 %v3529_v4  ;;  %v3562_v4 = vld [vmem:[%s4468_s4 + $0x220] sm:$0xff]  }
 0x148   : > { %3155 = vmatprep.subr.bf16.mxu1 %v3531_v5  ;;  %v3563_v5 = vld [vmem:[%s4468_s4 + $0x268] sm:$0xff]  }
 0x14b   : > { %3156 = vmatpush3.bf16.msra.mxu1 %v3533_v6  ;;  %v3564_v6 = vld [vmem:[%s4468_s4 + $0x228] sm:$0xff]  }
 0x14c   : > { %3157 = vmatprep.subr.bf16.mxu1 %v3535_v7  ;;  %v3565_v7 = vld [vmem:[%s4468_s4 + $0x270] sm:$0xff]  }
 0x14f   : > { %3158 = vmatpush3.bf16.msra.mxu1 %v3537_v8  ;;  %v3566_v8 = vld [vmem:[%s4468_s4 + $0x230] sm:$0xff]  }
 0x150   : > { %3159 = vmatprep.subr.bf16.mxu1 %v3539_v9  ;;  %v3567_v9 = vld [vmem:[%s4468_s4 + $0x278] sm:$0xff]  }
 0x153   : > { %3160 = vmatpush3.bf16.msra.mxu1 %v3541_v16  ;;  %v1508_v22 = vpop.f32.mrb[4].mxu0  ;;  %v608_v16 = vrot.slane %v566_v11, %v575_v43  ;;  %v3237_v43 = vpack.c.bf16 %v2558_v13, %v2557_v12  ;;  %v3076_v12 = vld [vmem:[#allocation2] ss:$0 sm:$0xff] }
 0x154   : > { %v1509_v25 = vadd.f32 %v1508_v22, %v588_v18  ;;  %v1510_v26 = vpop.f32.mrb[5].mxu0  ;;  %3161 = vmatprep.subr.bf16.mxu1 %v3543_v19 }
 0x155   : > { %v1511_v28 = vadd.f32 %v1510_v26, %v592_v20  ;;  %v1512_v29 = vpop.f32.mrb[6].mxu0  ;;  %v1551_v30 = vpop.f32.mrb[4].mxu1 }
 0x156   : > { %v1607_v31 = vmax.f32 %v1509_v25, 0.0  ;;  %v1513_v32 = vadd.f32 %v1512_v29, %v588_v18  ;;  %v1514_v33 = vpop.f32.mrb[7].mxu0  ;;  %v1552_v34 = vadd.f32 %v1551_v30, %v596_v21  ;;  %v1553_v35 = vpop.f32.mrb[5].mxu1 }
 0x157   : > { %v1515_v36 = vadd.f32 %v1514_v33, %v592_v20  ;;  %3162 = vmatpush3.bf16.msra.mxu1 %v3545_v23  ;;  %v1554_v37 = vadd.f32 %v1553_v35, %v600_v24  ;;  %v1555_v38 = vpop.f32.mrb[6].mxu1  ;;  %v1608_v45 = vmax.f32 %v1511_v28, 0.0 }
 0x158   : > { %v1617_v39 = vmax.f32 %v1513_v32, 0.0  ;;  %v1609_v40 = vmax.f32 %v1552_v34, 0.0  ;;  %v1556_v41 = vadd.f32 %v1555_v38, %v596_v21  ;;  %v1557_v42 = vpop.f32.mrb[7].mxu1  ;;  %3163 = vmatprep.subr.bf16.mxu1 %v3547_v27  ;;  %v2560_v32 = vld [vmem:[%s4471_s7 + $0x18] sm:$0xff] }
 0x159   : > { %v1618_v46 = vmax.f32 %v1515_v36, 0.0  ;;  %v1610_v47 = vmax.f32 %v1554_v37, 0.0  ;;  %v1558_v48 = vadd.f32 %v1557_v42, %v600_v24 }
 0x15a   : > { %v1627_v49 = vpack.c.bf16 %v1617_v39, %v1607_v31  ;;  %v1619_v50 = vmax.f32 %v1556_v41, 0.0  ;;  %v2559_v31 = vld [vmem:[%s4471_s7 + $0x10] sm:$0xff]  ;;  %v2652_v41 = vld [vmem:[%s4473_s9 + $0x8] sm:$0xff] }
 0x15b   : > { %v1628_v51 = vpack.c.bf16 %v1618_v46, %v1608_v45  ;;  %v1620_v52 = vmax.f32 %v1558_v48, 0.0  ;;  %3164 = vmatpush3.bf16.msra.mxu1 %v3549_v14  ;;  %v3241_v33 = vpack.c.bf16 %v2560_v32, %v2559_v31 }
 0x15c   : > { %v1629_v54 = vpack.c.bf16 %v1619_v50, %v1609_v40  ;;  %3165 = vmatprep.subr.bf16.mxu1 %v3551_v44  ;;  %v2651_v40 = vld [vmem:[%s4473_s9] sm:$0xff] }
 0x15d   : > { %v1630_v56 = vpack.c.bf16 %v1620_v52, %v1610_v47  ;;  %2455 = vmatprep.mubr.bf16.mxu0 %v1628_v51  ;;  %v4370_v58 = vpop.f32.mrb[8].mxu1  ;;  %v3245_v42 = vpack.c.bf16 %v2652_v41, %v2651_v40 }
 0x15e   : > { %2456 = vmatmul.mubr.bf16.vlgmr.msra.gmra.mrb[12].mxu0 %v1627_v49  ;;  %v3213_v59 = vpop.f32.mrb[9].mxu1 }
 0x15f   : > { %3166 = vmatpush3.bf16.msra.mxu1 %v3552_v53  ;;  %2496 = vmatprep.mubr.bf16.mxu1 %v1630_v56  ;;  %v4372_v60 = vpop.f32.mrb[10].mxu1 }
 0x160   : > { %3174 = vmatpush3.bf16.msra.mxu0 %v3554_v55  ;;  %v3214_v2 = vpop.f32.mrb[11].mxu1  ;;  %3238 = vmatprep.subr.bf16.mxu1 %v3237_v43 }
 0x161   : > { %3175 = vmatprep.subr.bf16.mxu0 %v3555_v57 }
 0x162   : > { %2497 = vmatmul.mubr.bf16.vlgmr.msra.gmra.mrb[20].mxu1 %v1629_v54 }
 0x163   : > { %3240 = vmatpush3.bf16.msra.mxu1 %v3237_v43 }
 0x164   : > { %3176 = vmatpush3.bf16.msra.mxu0 %v3556_v61  ;;  %3242 = vmatprep.subr.bf16.mxu1 %v3241_v33 }
 0x165   : > { %3177 = vmatprep.subr.bf16.mxu0 %v3557_v62 }
 0x167   : > { %3244 = vmatpush3.bf16.msra.mxu1 %v3241_v33 }
 0x168   : > { %3178 = vmatpush3.bf16.msra.mxu0 %v3558_v63  ;;  %3246 = vmatprep.subr.bf16.mxu1 %v3245_v42 }
 0x169   : > { %3179 = vmatprep.subr.bf16.mxu0 %v3559_v0 }
 0x16c   : > { %3180 = vmatpush3.bf16.msra.mxu0 %v3560_v1 }
 0x16d   : > { %3181 = vmatprep.subr.bf16.mxu0 %v3561_v3 }
 0x170   : > { %3182 = vmatpush3.bf16.msra.mxu0 %v3562_v4 }
 0x171   : > { %3183 = vmatprep.subr.bf16.mxu0 %v3563_v5 }
 0x174   : > { %3184 = vmatpush3.bf16.msra.mxu0 %v3564_v6 }
 0x175   : > { %3185 = vmatprep.subr.bf16.mxu0 %v3565_v7 }
 0x178   : > { %3186 = vmatpush3.bf16.msra.mxu0 %v3566_v8 }
 0x179   : > { %3187 = vmatprep.subr.bf16.mxu0 %v3567_v9  ;;  %v3072_v9 = vld [vmem:[%s4470_s6] ss:$0 sm:$0xff] }
 0x17c   : > { %3188 = vmatpush3.bf16.msra.mxu0 %v3568_v10 }
 0x18f   : > { %v1594_v17 = vpop.f32.mrb[8].mxu0 }
 0x190   : > { %v1595_v18 = vadd.f32 %v1594_v17, %v604_v15  ;;  %v1596_v19 = vpop.f32.mrb[9].mxu0 }
 0x191   : > { %v1597_v20 = vadd.f32 %v1596_v19, %v608_v16  ;;  %v1598_v21 = vpop.f32.mrb[10].mxu0 }
 0x192   : > { %v1599_v22 = vadd.f32 %v1598_v21, %v604_v15  ;;  %v1600_v23 = vpop.f32.mrb[11].mxu0  ;;  %v1611_v25 = vmax.f32 %v1595_v18, 0.0  ;;  %v2653_v21 = vld [vmem:[%s4473_s9 + $0x10] sm:$0xff] }
 0x193   : > { %v1601_v24 = vadd.f32 %v1600_v23, %v608_v16  ;;  %v1612_v27 = vmax.f32 %v1597_v20, 0.0 }
 0x194   : > { %v1621_v26 = vmax.f32 %v1599_v22, 0.0  ;;  %v2654_v22 = vld [vmem:[%s4473_s9 + $0x18] sm:$0xff] }
 0x195   : > { %v1622_v28 = vmax.f32 %v1601_v24, 0.0  ;;  %v3249_v23 = vpack.c.bf16 %v2654_v22, %v2653_v21  ;;  %v3073_v24 = vld [vmem:[%s4472_s8] ss:$0 sm:$0xff] }
 0x196   : > { %v1631_v29 = vpack.c.bf16 %v1621_v26, %v1611_v25 }
 0x197   : > { %v1632_v30 = vpack.c.bf16 %v1622_v28, %v1612_v27 }
 0x199   : > { %2537 = vmatprep.mubr.bf16.mxu0 %v1632_v30 }
 0x19a   : > { %2538 = vmatmul.mubr.bf16.vlgmr.msra.gmra.mrb[16].mxu0 %v1631_v29 }
 0x1f5   : > { %v3101_v34 = vpop.f32.mrb[12].mxu1 }
 0x1f6   : > { %v3102_v35 = vpop.f32.mrb[13].mxu1 }
 0x1f7   : > { %v3103_v36 = vadd.f32 %v3102_v35, %v3101_v34  ;;  %v3104_v37 = vpop.f32.mrb[14].mxu1 }
 0x1f8   : > { %v3105_v38 = vpop.f32.mrb[15].mxu1 }
 0x1f9   : > { %v2376_v14 = vadd.f32 %v3103_v36, %v4370_v58  ;;  %v3106_v39 = vadd.f32 %v3105_v38, %v3104_v37 }
 0x1fb   : > { %v2379_v44 = vadd.f32 %v3106_v39, %v4372_v60 }
 0x215   : > { %v3123_v45 = vpop.f32.mrb[16].mxu1 }
 0x216   : > { %v3124_v46 = vpop.f32.mrb[17].mxu1 }
 0x217   : > { %v3125_v47 = vadd.f32 %v3124_v46, %v3123_v45  ;;  %v3126_v48 = vpop.f32.mrb[18].mxu1 }
 0x218   : > { %v3127_v49 = vpop.f32.mrb[19].mxu1 }
 0x219   : > { %v2417_v50 = vadd.f32 %v3125_v47, %v2376_v14  ;;  %v3128_v51 = vadd.f32 %v3127_v49, %v3126_v48 }
 0x21b   : > { %v2420_v52 = vadd.f32 %v3128_v51, %v2379_v44 }
 0x231   : > { %v3145_v53 = vpop.f32.mrb[12].mxu0 }
 0x232   : > { %v3146_v54 = vpop.f32.mrb[13].mxu0 }
 0x233   : > { %v3147_v55 = vadd.f32 %v3146_v54, %v3145_v53  ;;  %v3148_v56 = vpop.f32.mrb[14].mxu0 }
 0x234   : > { %v3149_v57 = vpop.f32.mrb[15].mxu0 }
 0x235   : > { %v2458_v58 = vadd.f32 %v3147_v55, %v2417_v50  ;;  %v3150_v59 = vadd.f32 %v3149_v57, %v3148_v56  ;;  %v3167_v61 = vpop.f32.mrb[20].mxu1 }
 0x236   : > { %v3168_v2 = vpop.f32.mrb[21].mxu1 }
 0x237   : > { %v2461_v62 = vadd.f32 %v3150_v59, %v2420_v52  ;;  %v3169_v60 = vadd.f32 %v3168_v2, %v3167_v61  ;;  %v3170_v63 = vpop.f32.mrb[22].mxu1 }
 0x238   : > { %v3171_v0 = vpop.f32.mrb[23].mxu1 }
 0x239   : > { %v2499_v1 = vadd.f32 %v3169_v60, %v2458_v58  ;;  %v3172_v3 = vadd.f32 %v3171_v0, %v3170_v63 }
 0x23b   : > { %v2502_v4 = vadd.f32 %v3172_v3, %v2461_v62 }
 0x26d   : > { %v3189_v5 = vpop.f32.mrb[16].mxu0 }
 0x26e   : > { %v3190_v6 = vpop.f32.mrb[17].mxu0 }
 0x26f   : > { %v3191_v7 = vadd.f32 %v3190_v6, %v3189_v5  ;;  %v3192_v8 = vpop.f32.mrb[18].mxu0 }
 0x270   : > { %v3193_v10 = vpop.f32.mrb[19].mxu0 }
 0x271   : > { %v2540_v11 = vadd.f32 %v3191_v7, %v2499_v1  ;;  %v3194_v15 = vadd.f32 %v3193_v10, %v3192_v8 }
 0x273   : > { %v2553_v16 = vadd.f32 %v3072_v9, %v2540_v11  ;;  %v2543_v17 = vadd.f32 %v3194_v15, %v2502_v4 }
 0x275   : > { %v2555_v18 = vmax.f32 %v2553_v16, 0.0  ;;  %v2554_v19 = vadd.f32 %v3072_v9, %v2543_v17 }
 0x277   : > { %v2556_v20 = vmax.f32 %v2554_v19, 0.0  ;;  %3223 = vmatprep.mubr.msk.f32.mxu1 %vm1816_vm2, %v2555_v18 }
 0x279   : > { %3224 = vmatmul.mubr.msk.f32.vlgmr.msra.gmra.mrb[24].mxu1 %vm1816_vm2, %v2556_v20 }
 0x27a   : > { %3248 = vmatpush3.bf16.msra.mxu1 %v3245_v42 }
 0x27b   : > { %3250 = vmatprep.subr.bf16.mxu1 %v3249_v23 }
 0x27e   : > { %3252 = vmatpush3.bf16.msra.mxu1 %v3249_v23 }
 0x34c   : > { %v3225_v25 = vpop.f32.mrb[24].mxu1 }
 0x34d   : > { %v2646_v26 = vadd.f32 %v3225_v25, %v3073_v24  ;;  %v2640_v27 = vpop.f32.mrb[25].mxu1 }
 0x34e   : > { %v2641_v28 = vadd.f32 %v3073_v24, %v2640_v27 }
 0x34f   : > { %v2650_v30 = vmax.f32 %v2646_v26, 0.0 }
 0x350   : > { %v2649_v29 = vmax.f32 %v2641_v28, 0.0 }
 0x352   : > { %3234 = vmatprep.mubr.msk.f32.mxu1 %vm1816_vm2, %v2649_v29 }
 0x353   : > { %3235 = vmatmul.mubr.msk.f32.vlgmr.msra.gmra.mrb[26].mxu1 %vm1816_vm2, %v2650_v30 }
 0x426   : > { %v3236_v13 = vpop.f32.mrb[26].mxu1 }
 0x427   : > { %v2734_v43 = vpop.f32.mrb[27].mxu1  ;;  %v2740_v32 = vadd.f32 %v3236_v13, %v3076_v12 }
 0x428   : > { %v2735_v31 = vadd.f32 %v3076_v12, %v2734_v43 }
 0x429   : > { %2745 = vst.msk [vmem:[%s415_s14 + $0x8] sm:$0xff] %vm2743_vm4, %v2740_v32 }
 0x42a   : > { %2744 = vst.msk [vmem:[%s415_s14] sm:$0xff] %vm2743_vm4, %v2735_v31 }
 0x42b PF: > { %s23_s19 = sadd.s32 1, %s3575_s19  }
 0x42c   : > { %p20_p4 = scmp.ge.s32.totalorder %s23_s19, 6  }
 0x42e   :  { %22 = sbr.rel (!%p20_p4) target bundleno = 3 (0x3), region = 97 }

</bundles_post_ra>
